<compile_context>
chip_gen: v5e
topology: v5e:2x2
jax: 0.10.0
libtpu: 0.0.40
codegen_flags: <defaults>
</compile_context>

<pallas_src>
import functools

import jax
import jax.numpy as jnp
from jax import lax
from jax.experimental import pallas as pl
from jax.experimental.pallas import tpu as pltpu

WINDOW_SIZE = 11
SIGMA = 1.5
C1 = 0.01 ** 2
C2 = 0.03 ** 2


# ---------------------------------------------------------------------------
# Parameter / glue setup (plain JAX, host side)
# ---------------------------------------------------------------------------
def gaussian_1d(window_size, sigma):
    xs = jnp.arange(window_size, dtype=jnp.float32)
    g = jnp.exp(-((xs - window_size // 2) ** 2) / (2.0 * sigma ** 2))
    return g / jnp.sum(g)


def conv_matrix(n, g, window_size, right=False):
    """Toeplitz matrix realizing a 1-D 'same' zero-padded cross-correlation.

    left  (right=False): out = A @ x  with A[i, r] = g[r - i + pad]
    right (right=True) : out = x @ B  with B[c, j] = g[c - j + pad]
    """
    pad = window_size // 2
    r = jnp.arange(n)
    if right:
        d = r[:, None] - r[None, :] + pad
    else:
        d = r[None, :] - r[:, None] + pad
    valid = (d >= 0) & (d < window_size)
    return jnp.where(valid, g[jnp.clip(d, 0, window_size - 1)], 0.0).astype(jnp.float32)


def _physical_vmem_bytes():
    try:
        return int(pltpu.get_tpu_info().vmem_capacity_bytes)
    except Exception:
        return 128 << 20          # v5e/v6e physical VMEM; conservative default


def _plan(bc, h, w):
    """Pick h padding and TB (planes per slab)."""
    h_pad = ((h + 7) // 8) * 8
    # Cap TB*w at one native MXU tile width: kron(I_TB, B) has useful density
    # 1/TB, so MXU work per plane grows linearly in TB -- keep it near 128/256.
    lane_cap = 256
    if w >= lane_cap:
        tb = 1
    else:
        tb = max(1, min(bc, lane_cap // w))
        # If everything fits in one slab, prefer splitting into two slabs
        # (for the parallel grid axis / v7x megacore) as long as the lane
        # width stays at a full vreg (128 lanes).
        if tb >= bc and bc > 1:
            half = (bc + 1) // 2
            if half * w >= 128:
                tb = half
    tbw = tb * w
    nb = (bc + tb - 1) // tb
    return h_pad, tb, tbw, nb


def _pick_group(nb, h_pad, tbw, budget):
    """Slabs per grid step (amortizes ~0.35us/step fixed overhead)."""
    def vmem_est(g):
        inp = 2 * 2 * g * h_pad * tbw * 4              # x1/x2 blocks, double-buffered
        ops = 2 * ((5 * h_pad) ** 2 + tbw * tbw) * 4   # operators (<=2 buffers, conservative)
        out = 2 * g * tbw * 4                          # output block
        tmp = (3 * 5 + 10) * h_pad * tbw * 4           # s/t/conv stacks + elementwise temps
        return inp + ops + out + tmp

    g_cap = min(nb, 8)
    if nb >= 2:                       # keep >= 2 grid steps so both v7x TCs get work
        g_cap = min(g_cap, (nb + 1) // 2)
    g = 1
    for cand in range(1, max(1, g_cap) + 1):
        if vmem_est(cand) <= budget // 2:
            g = cand
    return g, vmem_est(g)


# ---------------------------------------------------------------------------
# Pallas kernel: G slabs per grid step, 2 fused MXU matmuls per slab,
# lane-dense elementwise tail, sublane-only in-kernel reduction.
# ---------------------------------------------------------------------------
def ssim_kernel(x1_ref, x2_ref, a5_ref, bbd_ref, out_ref, *, h, h_pad, g_count):
    a5 = a5_ref[...]        # (5*h_pad, 5*h_pad)  = kron(I5, A)   row ('same' H) conv
    bbd = bbd_ref[...]      # (TB*w, TB*w)        = kron(I_TB, B) col ('same' W) conv

    def one_slab(g, carry):
        x1 = x1_ref[g]      # (h_pad, TB*w) lane-dense slab of TB planes
        x2 = x2_ref[g]

        # Stack the five quantities to convolve along the sublane axis.
        s = jnp.concatenate([x1, x2, x1 * x1, x2 * x2, x1 * x2], axis=0)
        # Column conv for all 5*TB planes in one matmul, then row conv.
        t = jnp.dot(s, bbd, preferred_element_type=jnp.float32)
        conv = jnp.dot(a5, t, preferred_element_type=jnp.float32)

        mu1 = conv[0:h_pad]
        mu2 = conv[h_pad:2 * h_pad]
        e11 = conv[2 * h_pad:3 * h_pad]
        e22 = conv[3 * h_pad:4 * h_pad]
        e12 = conv[4 * h_pad:5 * h_pad]

        mu1_sq = mu1 * mu1
        mu2_sq = mu2 * mu2
        mu1_mu2 = mu1 * mu2
        sigma1_sq = e11 - mu1_sq
        sigma2_sq = e22 - mu2_sq
        sigma12 = e12 - mu1_mu2

        num = (2.0 * mu1_mu2 + C1) * (2.0 * sigma12 + C2)
        den = (mu1_sq + mu2_sq + C1) * (sigma1_sq + sigma2_sq + C2)
        # EUP approx reciprocal + one Newton step: off the VALU critical path,
        # keeps the 1e-4 rtol check.
        r = pl.reciprocal(den, approx=True)
        r = r * (2.0 - den * r)
        ssim_map = num * r

        if h_pad != h:      # zero padded rows so they don't enter the sum
            rows = lax.broadcasted_iota(jnp.int32, ssim_map.shape, 0)
            ssim_map = jnp.where(rows < h, ssim_map, 0.0)

        # Sublane-only partial reduction; lane-dense unmasked store.
        out_ref[g] = jnp.sum(ssim_map, axis=0, keepdims=True)
        return carry

    lax.fori_loop(0, g_count, one_slab, 0, unroll=True)


def ssim_pallas(img1, img2, window_size=WINDOW_SIZE):
    n, c, h, w = img1.shape
    bc = n * c

    h_pad, tb, tbw, nb = _plan(bc, h, w)

    phys_vmem = _physical_vmem_bytes()
    budget = int(phys_vmem * 0.75)            # headroom for Mosaic scratch/semaphores
    g, est = _pick_group(nb, h_pad, tbw, budget)
    nb_pad = ((nb + g - 1) // g) * g
    num_groups = nb_pad // g
    bc_pad = nb_pad * tb
    vmem_limit = int(min(budget, max(32 << 20, 2 * est)))

    # Wrapper-side layout plumbing: (bc, h, w) -> (nb_pad, h_pad, TB*w) slabs,
    # slab[b, r, p*w + col] = plane (b*TB + p) at pixel (r, col). Dummy planes
    # / rows are zero and excluded from the final mean.
    def to_slabs(x):
        x = x.reshape(bc, h, w).astype(jnp.float32)
        x = jnp.pad(x, ((0, bc_pad - bc), (0, h_pad - h), (0, 0)))
        return x.reshape(nb_pad, tb, h_pad, w).transpose(0, 2, 1, 3).reshape(
            nb_pad, h_pad, tbw)

    x1 = to_slabs(img1)
    x2 = to_slabs(img2)

    gauss = gaussian_1d(window_size, SIGMA)
    A = conv_matrix(h_pad, gauss, window_size, right=False)    # (h_pad, h_pad)
    B = conv_matrix(w, gauss, window_size, right=True)         # (w, w)
    A5 = jnp.kron(jnp.eye(5, dtype=jnp.float32), A)            # (5*h_pad, 5*h_pad)
    Bbd = jnp.kron(jnp.eye(tb, dtype=jnp.float32), B)          # (TB*w, TB*w)

    kernel = functools.partial(ssim_kernel, h=h, h_pad=h_pad, g_count=g)

    def run(single_buffer_ops):
        # A5/Bbd never change across grid steps -> single-buffer them to halve
        # their VMEM footprint (matters most on v7x's 64 MiB VMEM).
        op_kwargs = dict(pipeline_mode=pl.Buffered(1)) if single_buffer_ops else {}
        return pl.pallas_call(
            kernel,
            out_shape=jax.ShapeDtypeStruct((nb_pad, 1, tbw), jnp.float32),
            grid_spec=pltpu.PrefetchScalarGridSpec(
                num_scalar_prefetch=0,
                grid=(num_groups,),
                in_specs=[
                    pl.BlockSpec((g, h_pad, tbw), lambda i: (i, 0, 0)),
                    pl.BlockSpec((g, h_pad, tbw), lambda i: (i, 0, 0)),
                    pl.BlockSpec((5 * h_pad, 5 * h_pad), lambda i: (0, 0), **op_kwargs),
                    pl.BlockSpec((tbw, tbw), lambda i: (0, 0), **op_kwargs),
                ],
                out_specs=pl.BlockSpec((g, 1, tbw), lambda i: (i, 0, 0)),
            ),
            compiler_params=pltpu.CompilerParams(
                dimension_semantics=("parallel",),
                vmem_limit_bytes=vmem_limit),
        )(x1, x2, A5, Bbd)

    try:
        partial = run(True)
    except Exception:
        # Fallback if pipeline_mode / Buffered(1) is unsupported in this jax.
        partial = run(False)

    # Final cross-lane reduce + mean outside the kernel (excludes padding).
    per_plane = partial.reshape(nb_pad * tb, w)[:bc]
    return jnp.sum(per_plane) / float(bc * h * w)


# ---------------------------------------------------------------------------
# Pure-JAX reference (depthwise conv via lax.conv_general_dilated)
# ---------------------------------------------------------------------------
def ssim_ref(img1, img2, window_size=WINDOW_SIZE):
    _, c, _, _ = img1.shape
    g = gaussian_1d(window_size, SIGMA)
    w2d = jnp.outer(g, g)
    window = jnp.broadcast_to(w2d, (c, 1, window_size, window_size))
    pad = window_size // 2

    def conv(x):
        return lax.conv_general_dilated(
            x, window, window_strides=(1, 1),
            padding=((pad, pad), (pad, pad)),
            dimension_numbers=("NCHW", "OIHW", "NCHW"),
            feature_group_count=c)

    mu1 = conv(img1)
    mu2 = conv(img2)
    mu1_sq, mu2_sq, mu1_mu2 = mu1 * mu1, mu2 * mu2, mu1 * mu2
    s1 = conv(img1 * img1) - mu1_sq
    s2 = conv(img2 * img2) - mu2_sq
    s12 = conv(img1 * img2) - mu1_mu2
    ssim_map = ((2 * mu1_mu2 + C1) * (2 * s12 + C2)) / (
        (mu1_sq + mu2_sq + C1) * (s1 + s2 + C2))
    return ssim_map.mean()


if __name__ == "__main__":
    key = jax.random.PRNGKey(0)
    k1, k2 = jax.random.split(key)
    img1 = jax.random.uniform(k1, (2, 4, 16, 16), dtype=jnp.float32)
    img2 = jax.random.uniform(k2, (2, 4, 16, 16), dtype=jnp.float32)

    out = jax.block_until_ready(ssim_pallas(img1, img2))
    ref = jax.block_until_ready(ssim_ref(img1, img2))

    assert jnp.isfinite(out), "kernel produced non-finite SSIM"
    assert jnp.allclose(out, ref, rtol=1e-4, atol=1e-5), (out, ref)
    print("KERNEL_OK")
</pallas_src>

<mosaic_0001>
module attributes {stable_mosaic.version = 11 : i64} {
  func.func @ssim_kernel(%arg0: i32, %arg1: memref<1x16x128xf32, #tpu.memory_space<vmem>>, %arg2: memref<1x16x128xf32, #tpu.memory_space<vmem>>, %arg3: memref<80x80xf32, #tpu.memory_space<vmem>>, %arg4: memref<128x128xf32, #tpu.memory_space<vmem>>, %arg5: memref<1x1x128xf32, #tpu.memory_space<vmem>>) attributes {dimension_semantics = [#tpu.dimension_semantics<parallel>], iteration_bounds = array<i64: 1>, scalar_prefetch = 0 : i64, scratch_operands = 0 : i64, tpu.core_type = #tpu.core_type<tc>, window_params = [{transform_indices = @transform_0, window_bounds = array<i64: 1, 16, 128>}, {transform_indices = @transform_1, window_bounds = array<i64: 1, 16, 128>}, {pipeline_mode = #tpu.pipeline_mode<synchronous>, transform_indices = @transform_2, window_bounds = array<i64: 80, 80>}, {pipeline_mode = #tpu.pipeline_mode<synchronous>, transform_indices = @transform_3, window_bounds = array<i64: 128, 128>}, {transform_indices = @transform_4, window_bounds = array<i64: 1, 1, 128>}]} {
    %c0 = arith.constant 0 : index
    %c0_0 = arith.constant 0 : index
    %0 = vector.load %arg3[%c0, %c0_0] : memref<80x80xf32, #tpu.memory_space<vmem>>, vector<80x80xf32>
    %c0_1 = arith.constant 0 : index
    %c0_2 = arith.constant 0 : index
    %1 = vector.load %arg4[%c0_1, %c0_2] : memref<128x128xf32, #tpu.memory_space<vmem>>, vector<128x128xf32>
    %c0_i32 = arith.constant 0 : i32
    %2 = arith.index_cast %c0_i32 : i32 to index
    %c0_3 = arith.constant 0 : index
    %c0_4 = arith.constant 0 : index
    %3 = vector.load %arg1[%2, %c0_3, %c0_4] : memref<1x16x128xf32, #tpu.memory_space<vmem>>, vector<1x16x128xf32>
    %4 = vector.shape_cast %3 : vector<1x16x128xf32> to vector<16x128xf32>
    %5 = arith.index_cast %c0_i32 : i32 to index
    %c0_5 = arith.constant 0 : index
    %c0_6 = arith.constant 0 : index
    %6 = vector.load %arg2[%5, %c0_5, %c0_6] : memref<1x16x128xf32, #tpu.memory_space<vmem>>, vector<1x16x128xf32>
    %7 = vector.shape_cast %6 : vector<1x16x128xf32> to vector<16x128xf32>
    %8 = arith.mulf %4, %4 : vector<16x128xf32>
    %9 = arith.mulf %7, %7 : vector<16x128xf32>
    %10 = arith.mulf %4, %7 : vector<16x128xf32>
    %11 = tpu.concatenate %4, %7, %8, %9, %10 in 0 : vector<16x128xf32>, vector<16x128xf32>, vector<16x128xf32>, vector<16x128xf32>, vector<16x128xf32> -> vector<80x128xf32>
    %cst = arith.constant dense<0.000000e+00> : vector<80x128xf32>
    %12 = tpu.matmul %11, %1, %cst {dimension_numbers = #tpu.dot_dimension_numbers<[1], [0], [0], [1], [0, 0, 1, 1], [], []>} : vector<80x128xf32>, vector<128x128xf32>, vector<80x128xf32> -> vector<80x128xf32>
    %cst_7 = arith.constant dense<0.000000e+00> : vector<80x128xf32>
    %13 = tpu.matmul %0, %12, %cst_7 {dimension_numbers = #tpu.dot_dimension_numbers<[1], [0], [0], [1], [0, 0, 1, 1], [], []>} : vector<80x80xf32>, vector<80x128xf32>, vector<80x128xf32> -> vector<80x128xf32>
    %14 = vector.extract_strided_slice %13 {offsets = [0, 0], sizes = [16, 128], strides = [1, 1]} : vector<80x128xf32> to vector<16x128xf32>
    %15 = vector.extract_strided_slice %13 {offsets = [16, 0], sizes = [16, 128], strides = [1, 1]} : vector<80x128xf32> to vector<16x128xf32>
    %16 = vector.extract_strided_slice %13 {offsets = [32, 0], sizes = [16, 128], strides = [1, 1]} : vector<80x128xf32> to vector<16x128xf32>
    %17 = vector.extract_strided_slice %13 {offsets = [48, 0], sizes = [16, 128], strides = [1, 1]} : vector<80x128xf32> to vector<16x128xf32>
    %18 = vector.extract_strided_slice %13 {offsets = [64, 0], sizes = [16, 128], strides = [1, 1]} : vector<80x128xf32> to vector<16x128xf32>
    %19 = arith.mulf %14, %14 : vector<16x128xf32>
    %20 = arith.mulf %15, %15 : vector<16x128xf32>
    %21 = arith.mulf %14, %15 : vector<16x128xf32>
    %22 = arith.subf %16, %19 : vector<16x128xf32>
    %23 = arith.subf %17, %20 : vector<16x128xf32>
    %24 = arith.subf %18, %21 : vector<16x128xf32>
    %cst_8 = arith.constant 2.000000e+00 : f32
    %25 = vector.broadcast %cst_8 : f32 to vector<16x128xf32>
    %26 = arith.mulf %25, %21 : vector<16x128xf32>
    %cst_9 = arith.constant 9.99999974E-5 : f32
    %27 = vector.broadcast %cst_9 : f32 to vector<16x128xf32>
    %28 = arith.addf %26, %27 : vector<16x128xf32>
    %cst_10 = arith.constant 2.000000e+00 : f32
    %29 = vector.broadcast %cst_10 : f32 to vector<16x128xf32>
    %30 = arith.mulf %29, %24 : vector<16x128xf32>
    %cst_11 = arith.constant 8.99999984E-4 : f32
    %31 = vector.broadcast %cst_11 : f32 to vector<16x128xf32>
    %32 = arith.addf %30, %31 : vector<16x128xf32>
    %33 = arith.mulf %28, %32 : vector<16x128xf32>
    %34 = arith.addf %19, %20 : vector<16x128xf32>
    %cst_12 = arith.constant 9.99999974E-5 : f32
    %35 = vector.broadcast %cst_12 : f32 to vector<16x128xf32>
    %36 = arith.addf %34, %35 : vector<16x128xf32>
    %37 = arith.addf %22, %23 : vector<16x128xf32>
    %cst_13 = arith.constant 8.99999984E-4 : f32
    %38 = vector.broadcast %cst_13 : f32 to vector<16x128xf32>
    %39 = arith.addf %37, %38 : vector<16x128xf32>
    %40 = arith.mulf %36, %39 : vector<16x128xf32>
    %41 = tpu.reciprocal %40 {approx = true} : vector<16x128xf32> -> vector<16x128xf32>
    %42 = arith.mulf %40, %41 : vector<16x128xf32>
    %cst_14 = arith.constant 2.000000e+00 : f32
    %43 = vector.broadcast %cst_14 : f32 to vector<16x128xf32>
    %44 = arith.subf %43, %42 : vector<16x128xf32>
    %45 = arith.mulf %41, %44 : vector<16x128xf32>
    %46 = arith.mulf %33, %45 : vector<16x128xf32>
    %cst_15 = arith.constant dense<0.000000e+00> : vector<128xf32>
    %47 = vector.multi_reduction <add>, %46, %cst_15 [0] : vector<16x128xf32> to vector<128xf32>
    %48 = vector.shape_cast %47 : vector<128xf32> to vector<1x128xf32>
    %49 = arith.index_cast %c0_i32 : i32 to index
    %c0_16 = arith.constant 0 : index
    %c0_17 = arith.constant 0 : index
    %50 = vector.load %arg5[%49, %c0_16, %c0_17] : memref<1x1x128xf32, #tpu.memory_space<vmem>>, vector<1x1x128xf32>
    %51 = vector.shape_cast %50 : vector<1x1x128xf32> to vector<1x128xf32>
    %52 = vector.shape_cast %48 : vector<1x128xf32> to vector<1x1x128xf32>
    tpu.vector_store %arg5[%49, %c0_16, %c0_17], %52 {strides = array<i32>} : memref<1x1x128xf32, #tpu.memory_space<vmem>>, vector<1x1x128xf32>,
    %c1_i32 = arith.constant 1 : i32
    return
  }
  func.func @transform_0(%arg0: i32) -> (i32, i32, i32) {
    %c0_i32 = arith.constant 0 : i32
    %c0_i32_0 = arith.constant 0 : i32
    %c0_i32_1 = arith.constant 0 : i32
    return %arg0, %c0_i32, %c0_i32_0 : i32, i32, i32
  }
  func.func @transform_1(%arg0: i32) -> (i32, i32, i32) {
    %c0_i32 = arith.constant 0 : i32
    %c0_i32_0 = arith.constant 0 : i32
    %c0_i32_1 = arith.constant 0 : i32
    return %arg0, %c0_i32, %c0_i32_0 : i32, i32, i32
  }
  func.func @transform_2(%arg0: i32) -> (i32, i32) {
    %c0_i32 = arith.constant 0 : i32
    %c0_i32_0 = arith.constant 0 : i32
    %c0_i32_1 = arith.constant 0 : i32
    return %c0_i32, %c0_i32_0 : i32, i32
  }
  func.func @transform_3(%arg0: i32) -> (i32, i32) {
    %c0_i32 = arith.constant 0 : i32
    %c0_i32_0 = arith.constant 0 : i32
    %c0_i32_1 = arith.constant 0 : i32
    return %c0_i32, %c0_i32_0 : i32, i32
  }
  func.func @transform_4(%arg0: i32) -> (i32, i32, i32) {
    %c0_i32 = arith.constant 0 : i32
    %c0_i32_0 = arith.constant 0 : i32
    %c0_i32_1 = arith.constant 0 : i32
    return %arg0, %c0_i32, %c0_i32_0 : i32, i32, i32
  }
}

module attributes {stable_mosaic.version = 11 : i64} {
  func.func @ssim_kernel(%arg0: i32, %arg1: memref<1x16x128xf32, #tpu.memory_space<vmem>>, %arg2: memref<1x16x128xf32, #tpu.memory_space<vmem>>, %arg3: memref<80x80xf32, #tpu.memory_space<vmem>>, %arg4: memref<128x128xf32, #tpu.memory_space<vmem>>, %arg5: memref<1x1x128xf32, #tpu.memory_space<vmem>>) attributes {dimension_semantics = [#tpu.dimension_semantics<parallel>], iteration_bounds = array<i64: 1>, scalar_prefetch = 0 : i64, scratch_operands = 0 : i64, tpu.core_type = #tpu.core_type<tc>, window_params = [{transform_indices = @transform_0, window_bounds = array<i64: 1, 16, 128>}, {transform_indices = @transform_1, window_bounds = array<i64: 1, 16, 128>}, {pipeline_mode = #tpu.pipeline_mode<synchronous>, transform_indices = @transform_2, window_bounds = array<i64: 80, 80>}, {pipeline_mode = #tpu.pipeline_mode<synchronous>, transform_indices = @transform_3, window_bounds = array<i64: 128, 128>}, {transform_indices = @transform_4, window_bounds = array<i64: 1, 1, 128>}]} {
    %c0 = arith.constant 0 : index
    %c0_0 = arith.constant 0 : index
    %0 = vector.load %arg3[%c0, %c0_0] : memref<80x80xf32, #tpu.memory_space<vmem>>, vector<80x80xf32>
    %c0_1 = arith.constant 0 : index
    %c0_2 = arith.constant 0 : index
    %1 = vector.load %arg4[%c0_1, %c0_2] : memref<128x128xf32, #tpu.memory_space<vmem>>, vector<128x128xf32>
    %c0_i32 = arith.constant 0 : i32
    %2 = arith.index_cast %c0_i32 : i32 to index
    %c0_3 = arith.constant 0 : index
    %c0_4 = arith.constant 0 : index
    %3 = vector.load %arg1[%2, %c0_3, %c0_4] : memref<1x16x128xf32, #tpu.memory_space<vmem>>, vector<1x16x128xf32>
    %4 = vector.shape_cast %3 : vector<1x16x128xf32> to vector<16x128xf32>
    %5 = arith.index_cast %c0_i32 : i32 to index
    %c0_5 = arith.constant 0 : index
    %c0_6 = arith.constant 0 : index
    %6 = vector.load %arg2[%5, %c0_5, %c0_6] : memref<1x16x128xf32, #tpu.memory_space<vmem>>, vector<1x16x128xf32>
    %7 = vector.shape_cast %6 : vector<1x16x128xf32> to vector<16x128xf32>
    %8 = arith.mulf %4, %4 : vector<16x128xf32>
    %9 = arith.mulf %7, %7 : vector<16x128xf32>
    %10 = arith.mulf %4, %7 : vector<16x128xf32>
    %11 = tpu.concatenate %4, %7, %8, %9, %10 in 0 : vector<16x128xf32>, vector<16x128xf32>, vector<16x128xf32>, vector<16x128xf32>, vector<16x128xf32> -> vector<80x128xf32>
    %cst = arith.constant dense<0.000000e+00> : vector<80x128xf32>
    %12 = tpu.matmul %11, %1, %cst {dimension_numbers = #tpu.dot_dimension_numbers<[1], [0], [0], [1], [0, 0, 1, 1], [], []>} : vector<80x128xf32>, vector<128x128xf32>, vector<80x128xf32> -> vector<80x128xf32>
    %cst_7 = arith.constant dense<0.000000e+00> : vector<80x128xf32>
    %13 = tpu.matmul %0, %12, %cst_7 {dimension_numbers = #tpu.dot_dimension_numbers<[1], [0], [0], [1], [0, 0, 1, 1], [], []>} : vector<80x80xf32>, vector<80x128xf32>, vector<80x128xf32> -> vector<80x128xf32>
    %14 = vector.extract_strided_slice %13 {offsets = [0, 0], sizes = [16, 128], strides = [1, 1]} : vector<80x128xf32> to vector<16x128xf32>
    %15 = vector.extract_strided_slice %13 {offsets = [16, 0], sizes = [16, 128], strides = [1, 1]} : vector<80x128xf32> to vector<16x128xf32>
    %16 = vector.extract_strided_slice %13 {offsets = [32, 0], sizes = [16, 128], strides = [1, 1]} : vector<80x128xf32> to vector<16x128xf32>
    %17 = vector.extract_strided_slice %13 {offsets = [48, 0], sizes = [16, 128], strides = [1, 1]} : vector<80x128xf32> to vector<16x128xf32>
    %18 = vector.extract_strided_slice %13 {offsets = [64, 0], sizes = [16, 128], strides = [1, 1]} : vector<80x128xf32> to vector<16x128xf32>
    %19 = arith.mulf %14, %14 : vector<16x128xf32>
    %20 = arith.mulf %15, %15 : vector<16x128xf32>
    %21 = arith.mulf %14, %15 : vector<16x128xf32>
    %22 = arith.subf %16, %19 : vector<16x128xf32>
    %23 = arith.subf %17, %20 : vector<16x128xf32>
    %24 = arith.subf %18, %21 : vector<16x128xf32>
    %cst_8 = arith.constant 2.000000e+00 : f32
    %25 = vector.broadcast %cst_8 : f32 to vector<16x128xf32>
    %26 = arith.mulf %25, %21 : vector<16x128xf32>
    %cst_9 = arith.constant 9.99999974E-5 : f32
    %27 = vector.broadcast %cst_9 : f32 to vector<16x128xf32>
    %28 = arith.addf %26, %27 : vector<16x128xf32>
    %cst_10 = arith.constant 2.000000e+00 : f32
    %29 = vector.broadcast %cst_10 : f32 to vector<16x128xf32>
    %30 = arith.mulf %29, %24 : vector<16x128xf32>
    %cst_11 = arith.constant 8.99999984E-4 : f32
    %31 = vector.broadcast %cst_11 : f32 to vector<16x128xf32>
    %32 = arith.addf %30, %31 : vector<16x128xf32>
    %33 = arith.mulf %28, %32 : vector<16x128xf32>
    %34 = arith.addf %19, %20 : vector<16x128xf32>
    %cst_12 = arith.constant 9.99999974E-5 : f32
    %35 = vector.broadcast %cst_12 : f32 to vector<16x128xf32>
    %36 = arith.addf %34, %35 : vector<16x128xf32>
    %37 = arith.addf %22, %23 : vector<16x128xf32>
    %cst_13 = arith.constant 8.99999984E-4 : f32
    %38 = vector.broadcast %cst_13 : f32 to vector<16x128xf32>
    %39 = arith.addf %37, %38 : vector<16x128xf32>
    %40 = arith.mulf %36, %39 : vector<16x128xf32>
    %41 = tpu.reciprocal %40 {approx = true} : vector<16x128xf32> -> vector<16x128xf32>
    %42 = arith.mulf %40, %41 : vector<16x128xf32>
    %cst_14 = arith.constant 2.000000e+00 : f32
    %43 = vector.broadcast %cst_14 : f32 to vector<16x128xf32>
    %44 = arith.subf %43, %42 : vector<16x128xf32>
    %45 = arith.mulf %41, %44 : vector<16x128xf32>
    %46 = arith.mulf %33, %45 : vector<16x128xf32>
    %cst_15 = arith.constant dense<0.000000e+00> : vector<128xf32>
    %47 = vector.multi_reduction <add>, %46, %cst_15 [0] : vector<16x128xf32> to vector<128xf32>
    %48 = vector.shape_cast %47 : vector<128xf32> to vector<1x128xf32>
    %49 = arith.index_cast %c0_i32 : i32 to index
    %c0_16 = arith.constant 0 : index
    %c0_17 = arith.constant 0 : index
    %50 = vector.load %arg5[%49, %c0_16, %c0_17] : memref<1x1x128xf32, #tpu.memory_space<vmem>>, vector<1x1x128xf32>
    %51 = vector.shape_cast %50 : vector<1x1x128xf32> to vector<1x128xf32>
    %52 = vector.shape_cast %48 : vector<1x128xf32> to vector<1x1x128xf32>
    tpu.vector_store %arg5[%49, %c0_16, %c0_17], %52 {strides = array<i32>} : memref<1x1x128xf32, #tpu.memory_space<vmem>>, vector<1x1x128xf32>,
    %c1_i32 = arith.constant 1 : i32
    return
  }
  func.func @transform_0(%arg0: i32) -> (i32, i32, i32) {
    %c0_i32 = arith.constant 0 : i32
    %c0_i32_0 = arith.constant 0 : i32
    %c0_i32_1 = arith.constant 0 : i32
    return %arg0, %c0_i32, %c0_i32_0 : i32, i32, i32
  }
  func.func @transform_1(%arg0: i32) -> (i32, i32, i32) {
    %c0_i32 = arith.constant 0 : i32
    %c0_i32_0 = arith.constant 0 : i32
    %c0_i32_1 = arith.constant 0 : i32
    return %arg0, %c0_i32, %c0_i32_0 : i32, i32, i32
  }
  func.func @transform_2(%arg0: i32) -> (i32, i32) {
    %c0_i32 = arith.constant 0 : i32
    %c0_i32_0 = arith.constant 0 : i32
    %c0_i32_1 = arith.constant 0 : i32
    return %c0_i32, %c0_i32_0 : i32, i32
  }
  func.func @transform_3(%arg0: i32) -> (i32, i32) {
    %c0_i32 = arith.constant 0 : i32
    %c0_i32_0 = arith.constant 0 : i32
    %c0_i32_1 = arith.constant 0 : i32
    return %c0_i32, %c0_i32_0 : i32, i32
  }
  func.func @transform_4(%arg0: i32) -> (i32, i32, i32) {
    %c0_i32 = arith.constant 0 : i32
    %c0_i32_0 = arith.constant 0 : i32
    %c0_i32_1 = arith.constant 0 : i32
    return %arg0, %c0_i32, %c0_i32_0 : i32, i32, i32
  }
}

</mosaic_0001>

<bundles_post_ra>
// kernel: tpu_custom_call.1
= control target key start
LH: loop header
LB: loop body
LE: loop exit
PB: predicated region body
PF: predicated region fallthrough
CT: control target
= control target key end

     0   :  { %9 = vsyncpa [#allocation3], 0  ;;  %s543_s0 = inlined_call_operand.hbm [shape: f32[1,16,128], index: 0, kind: input, shape index: {}]   ;;  %s544_s1 = inlined_call_operand.hbm [shape: f32[1,16,128], index: 1, kind: input, shape index: {}]   ;;  %s545_s2 = inlined_call_operand.hbm [shape: f32[80,80], index: 2, kind: input, shape index: {}]   ;;  %s546_s3 = inlined_call_operand.hbm [shape: f32[128,128], index: 3, kind: input, shape index: {}]   ;;  %s547_s4 = inlined_call_operand.hbm [shape: f32[1,1,128], index: 4, kind: output, shape index: {}]  }
   0x1   :  { %10 = vsyncpa [#allocation6], 0 }
   0x2   :  { %11 = vsyncpa [#allocation9], 0 }
   0x3   :  { %12 = vsyncpa [#allocation4], 0  ;;  %s30_s17 = sshll.u32 %s544_s1, 4  ;;  %s486_s18 = smov [#allocation5]   ;;  %s31_s17 = int_to_ptr.hbm [resolvable:$true] %s30_s17 }
   0x4   :  { %s32_s19 = sshll.u32 %s486_s18, 4  ;;  %s17_s22 = sshll.u32 %s543_s0, 4  ;;  %s33_s19 = int_to_ptr.vmem [resolvable:$true] %s32_s19  ;;  %s18_s22 = int_to_ptr.hbm [resolvable:$true] %s17_s22 }
   0x5   :  { %s487_s23 = smov 128   ;;  %s488_s24 = smov 8  }
   0x6   :  { %38 = dma.hbm_to_vmem [thread:$0]  %s31_s17, 256, %s33_s19, [#allocation6], %s487_s23, %s487_s23, %s488_s24  }
   0x7   :  { %s489_s25 = smov [#allocation2]   ;;  %s43_s29 = sshll.u32 %s545_s2, 4  ;;  %s44_s29 = int_to_ptr.hbm [resolvable:$true] %s43_s29 }
   0x8   :  { %s19_s26 = sshll.u32 %s489_s25, 4  ;;  %s56_s5 = sshll.u32 %s546_s3, 4  ;;  %s20_s26 = int_to_ptr.vmem [resolvable:$true] %s19_s26  ;;  %s57_s5 = int_to_ptr.hbm [resolvable:$true] %s56_s5 }
   0x9   :  { %25 = dma.hbm_to_vmem [thread:$0]  %s18_s22, 256, %s20_s26, [#allocation3], %s487_s23, %s487_s23, %s488_s24  }
   0xa   :  { %s490_s6 = smov [#allocation7]   ;;  %s491_s0 = smov [#allocation8]  }
   0xb   :  { %s45_s7 = sshll.u32 %s490_s6, 4  ;;  %s58_s8 = sshll.u32 %s491_s0, 4  ;;  %s46_s7 = int_to_ptr.vmem [resolvable:$true] %s45_s7  ;;  %s59_s8 = int_to_ptr.vmem [resolvable:$true] %s58_s8 }
   0xc   :  { %51 = dma.hbm_to_vmem [thread:$0]  %s44_s29, 1280, %s46_s7, [#allocation6], %s487_s23, %s487_s23, %s488_s24  }
   0xd   :  { %64 = dma.hbm_to_vmem [thread:$0]  %s57_s5, 2048, %s59_s8, [#allocation9], %s487_s23, %s487_s23, %s488_s24  }
   0xe   :  { %478 = dma.done.wait [#allocation3], 256  }
   0xf   :  { %479 = vsyncadd [#allocation3], 4294967040 }
  0x10   :  { %480 = dma.done.wait [#allocation6], 1536  }
  0x11   :  { %481 = vsyncadd [#allocation6], 4294965760 }
  0x12   :  { %482 = dma.done.wait [#allocation9], 2048  }
  0x13   :  { %483 = vsyncadd [#allocation9], 4294965248  ;;  %v106_v0 = vld [vmem:[#allocation8 + $0x78] sm:$0xff]  ;;  %v105_v1 = vld [vmem:[#allocation8 + $0x70] sm:$0xff]  ;;  %vm164_vm0 = vcmask 654336   ;;  %s492_s2 = smov [#allocation10]  }
  0x14   :  { %321 = vmatpush.msra.mxu2 %v106_v0  ;;  %117 = vmatpush.msra.mxu0 %v106_v0  ;;  %v104_v2 = vld [vmem:[#allocation8 + $0x68] sm:$0xff]  ;;  %v103_v3 = vld [vmem:[#allocation8 + $0x60] sm:$0xff]  ;;  %v102_v4 = vld [vmem:[#allocation8 + $0x58] sm:$0xff]  ;;  %s297_s3 = sshll.u32 %s492_s2, 4  ;;  %s299_s11 = sshll.u32 %s547_s4, 4  ;;  %s298_s3 = int_to_ptr.vmem [resolvable:$true] %s297_s3  ;;  %s300_s11 = int_to_ptr.hbm [resolvable:$true] %s299_s11 }
  0x15   :  { %v101_v5 = vld [vmem:[#allocation8 + $0x50] sm:$0xff]  ;;  %v100_v6 = vld [vmem:[#allocation8 + $0x48] sm:$0xff]  ;;  %v99_v7 = vld [vmem:[#allocation8 + $0x40] sm:$0xff] }
  0x16   :  { %322 = vmatpush.msra.mxu2 %v105_v1  ;;  %118 = vmatpush.msra.mxu0 %v105_v1  ;;  %v98_v8 = vld [vmem:[#allocation8 + $0x38] sm:$0xff]  ;;  %v97_v9 = vld [vmem:[#allocation8 + $0x30] sm:$0xff]  ;;  %v96_v10 = vld [vmem:[#allocation8 + $0x28] sm:$0xff] }
  0x17   :  { %v95_v11 = vld [vmem:[#allocation8 + $0x20] sm:$0xff]  ;;  %v94_v12 = vld [vmem:[#allocation8 + $0x18] sm:$0xff]  ;;  %v93_v13 = vld [vmem:[#allocation8 + $0x10] sm:$0xff] }
  0x18   :  { %323 = vmatpush.msra.mxu2 %v104_v2  ;;  %119 = vmatpush.msra.mxu0 %v104_v2  ;;  %v107_v14 = vld [vmem:[#allocation2] sm:$0xff]  ;;  %v92_v15 = vld [vmem:[#allocation8 + $0x8] sm:$0xff]  ;;  %v91_v16 = vld [vmem:[#allocation8] sm:$0xff] }
  0x19   :  { %v111_v17 = vmul.f32 %v107_v14, %v107_v14  ;;  %v108_v18 = vld [vmem:[#allocation2 + $0x8] sm:$0xff]  ;;  %v109_v20 = vld [vmem:[#allocation5] sm:$0xff]  ;;  %v110_v22 = vld [vmem:[#allocation5 + $0x8] sm:$0xff] }
  0x1a   :  { %324 = vmatpush.msra.mxu2 %v103_v3  ;;  %120 = vmatpush.msra.mxu0 %v103_v3  ;;  %v112_v19 = vmul.f32 %v108_v18, %v108_v18  ;;  %v113_v21 = vmul.f32 %v109_v20, %v109_v20  ;;  %v114_v23 = vmul.f32 %v110_v22, %v110_v22  ;;  %v81_v36 = vld [vmem:[#allocation7] sm:$0xff]  ;;  %v87_v37 = vld [vmem:[#allocation7 + $0x30] sm:$0xff]  ;;  %v82_v38 = vld [vmem:[#allocation7 + $0x8] sm:$0xff] }
  0x1b   :  { %v115_v24 = vmul.f32 %v109_v20, %v107_v14  ;;  %v116_v25 = vmul.f32 %v110_v22, %v108_v18  ;;  %v88_v39 = vld [vmem:[#allocation7 + $0x38] sm:$0xff]  ;;  %v83_v40 = vld [vmem:[#allocation7 + $0x10] sm:$0xff]  ;;  %v89_v41 = vld [vmem:[#allocation7 + $0x40] sm:$0xff] }
  0x1c   :  { %325 = vmatpush.msra.mxu2 %v102_v4  ;;  %121 = vmatpush.msra.mxu0 %v102_v4  ;;  %v84_v42 = vld [vmem:[#allocation7 + $0x18] sm:$0xff]  ;;  %v90_v43 = vld [vmem:[#allocation7 + $0x48] sm:$0xff]  ;;  %v85_v44 = vld [vmem:[#allocation7 + $0x20] sm:$0xff] }
  0x1d   :  { %v86_v45 = vld [vmem:[#allocation7 + $0x28] sm:$0xff] }
  0x1e   :  { %326 = vmatpush.msra.mxu2 %v101_v5  ;;  %122 = vmatpush.msra.mxu0 %v101_v5 }
  0x20   :  { %327 = vmatpush.msra.mxu2 %v100_v6  ;;  %123 = vmatpush.msra.mxu0 %v100_v6 }
  0x22   :  { %328 = vmatpush.msra.mxu2 %v99_v7  ;;  %124 = vmatpush.msra.mxu0 %v99_v7 }
  0x24   :  { %329 = vmatpush.msra.mxu2 %v98_v8  ;;  %125 = vmatpush.msra.mxu0 %v98_v8 }
  0x26   :  { %330 = vmatpush.msra.mxu2 %v97_v9  ;;  %126 = vmatpush.msra.mxu0 %v97_v9 }
  0x28   :  { %331 = vmatpush.msra.mxu2 %v96_v10  ;;  %127 = vmatpush.msra.mxu0 %v96_v10 }
  0x2a   :  { %332 = vmatpush.msra.mxu2 %v95_v11  ;;  %128 = vmatpush.msra.mxu0 %v95_v11 }
  0x2c   :  { %333 = vmatpush.msra.mxu2 %v94_v12  ;;  %129 = vmatpush.msra.mxu0 %v94_v12 }
  0x2e   :  { %334 = vmatpush.msra.mxu2 %v93_v13  ;;  %130 = vmatpush.msra.mxu0 %v93_v13 }
  0x30   :  { %335 = vmatpush.msra.mxu2 %v92_v15  ;;  %131 = vmatpush.msra.mxu0 %v92_v15 }
  0x32   :  { %336 = vmatpush.msra.mxu2 %v91_v16  ;;  %132 = vmatpush.msra.mxu0 %v91_v16 }
  0x33   :  { %145 = vmatmul.f32.vlgmr.msra.gmra.mxu2 %v111_v17  ;;  %133 = vmatmul.f32.vlgmr.msra.gmra.mxu0 %v107_v14 }
  0x3b   :  { %148 = vmatmul.f32.gmra.mxu2 %v112_v19  ;;  %136 = vmatmul.f32.gmra.mxu0 %v108_v18 }
  0x43   :  { %151 = vmatmul.f32.gmra.mxu2 %v113_v21  ;;  %139 = vmatmul.f32.gmra.mxu0 %v109_v20 }
  0x4b   :  { %154 = vmatmul.f32.gmra.mxu2 %v114_v23  ;;  %142 = vmatmul.f32.gmra.mxu0 %v110_v22 }
  0x53   :  { %157 = vmatmul.f32.gmra.mxu2 %v115_v24 }
  0x5b   :  { %160 = vmatmul.f32.gmra.mxu2 %v116_v25 }
  0xb0   :  { %v134_v29 = vpop.f32.mrf.mxu0 }
  0xb6   :  { %v146_v26 = vpop.f32.mrf.mxu2 }
  0xb8   :  { %v137_v31 = vpop.f32.mrf.mxu0 }
  0xbe   :  { %v149_v27 = vpop.f32.mrf.mxu2 }
  0xc0   :  { %v140_v34 = vpop.f32.mrf.mxu0 }
  0xc6   :  { %v152_v28 = vpop.f32.mrf.mxu2 }
  0xc8   :  { %v143_v35 = vpop.f32.mrf.mxu0 }
  0xce   :  { %v155_v30 = vpop.f32.mrf.mxu2 }
  0xd6   :  { %v158_v32 = vpop.f32.mrf.mxu2 }
  0xde   :  { %v161_v33 = vpop.f32.mrf.mxu2 }
  0xdf   :  { %201 = vmatpush.msra.mxu1 %v161_v33  ;;  %337 = vmatpush.msra.mxu3 %v161_v33 }
  0xe1   :  { %202 = vmatpush.msra.mxu1 %v158_v32  ;;  %338 = vmatpush.msra.mxu3 %v158_v32 }
  0xe3   :  { %203 = vmatpush.msra.mxu1 %v155_v30  ;;  %339 = vmatpush.msra.mxu3 %v155_v30 }
  0xe5   :  { %204 = vmatpush.msra.mxu1 %v152_v28  ;;  %340 = vmatpush.msra.mxu3 %v152_v28 }
  0xe7   :  { %205 = vmatpush.msra.mxu1 %v149_v27  ;;  %341 = vmatpush.msra.mxu3 %v149_v27 }
  0xe9   :  { %206 = vmatpush.msra.mxu1 %v146_v26  ;;  %342 = vmatpush.msra.mxu3 %v146_v26 }
  0xeb   :  { %207 = vmatpush.msra.mxu1 %v143_v35  ;;  %343 = vmatpush.msra.mxu3 %v143_v35 }
  0xed   :  { %208 = vmatpush.msra.mxu1 %v140_v34  ;;  %344 = vmatpush.msra.mxu3 %v140_v34 }
  0xef   :  { %209 = vmatpush.msra.mxu1 %v137_v31  ;;  %345 = vmatpush.msra.mxu3 %v137_v31 }
  0xf1   :  { %210 = vmatpush.msra.mxu1 %v134_v29  ;;  %346 = vmatpush.msra.mxu3 %v134_v29 }
  0xf2   :  { %311 = vmatmul.msk.f32.vlgmr.msra.gmra.mxu1 %vm164_vm0, %v81_v36  ;;  %317 = vmatmul.msk.f32.vlgmr.msra.gmra.mxu3 %vm164_vm0, %v87_v37 }
  0xfa   :  { %312 = vmatmul.msk.f32.gmra.mxu1 %vm164_vm0, %v82_v38  ;;  %318 = vmatmul.msk.f32.gmra.mxu3 %vm164_vm0, %v88_v39 }
 0x102   :  { %313 = vmatmul.msk.f32.gmra.mxu1 %vm164_vm0, %v83_v40  ;;  %319 = vmatmul.msk.f32.gmra.mxu3 %vm164_vm0, %v89_v41 }
 0x10a   :  { %314 = vmatmul.msk.f32.gmra.mxu1 %vm164_vm0, %v84_v42  ;;  %320 = vmatmul.msk.f32.gmra.mxu3 %vm164_vm0, %v90_v43 }
 0x112   :  { %315 = vmatmul.msk.f32.gmra.mxu1 %vm164_vm0, %v85_v44 }
 0x11a   :  { %316 = vmatmul.msk.f32.gmra.mxu1 %vm164_vm0, %v86_v45 }
 0x16f   :  { %v212_v46 = vpop.f32.mrf.mxu1 }
 0x170   :  { %v242_v53 = vmul.f32 %v212_v46, %v212_v46 }
 0x175   :  { %v230_v48 = vpop.f32.mrf.mxu3 }
 0x177   :  { %v215_v47 = vpop.f32.mrf.mxu1 }
 0x178   :  { %v243_v63 = vmul.f32 %v215_v47, %v215_v47 }
 0x17d   :  { %v233_v51 = vpop.f32.mrf.mxu3 }
 0x17f   :  { %v218_v49 = vpop.f32.mrf.mxu1 }
 0x180   :  { %v244_v52 = vmul.f32 %v218_v49, %v218_v49  ;;  %v246_v9 = vmul.f32 %v218_v49, %v212_v46 }
 0x182   :  { %v250_v55 = vsub.f32 %v230_v48, %v244_v52  ;;  %v264_v56 = vadd.f32 %v244_v52, %v242_v53  ;;  %v254_v18 = vmul.f32 2.0, %v246_v9 }
 0x184   :  { %v266_v60 = vadd.f32 0.0001, %v264_v56  ;;  %v256_v25 = vadd.f32 0.0001, %v254_v18 }
 0x185   :  { %v236_v58 = vpop.f32.mrf.mxu3 }
 0x186   :  { %v252_v13 = vsub.f32 %v236_v58, %v246_v9 }
 0x187   :  { %v221_v50 = vpop.f32.mrf.mxu1 }
 0x188   :  { %v245_v61 = vmul.f32 %v221_v50, %v221_v50  ;;  %v247_v10 = vmul.f32 %v221_v50, %v215_v47  ;;  %v258_v16 = vmul.f32 2.0, %v252_v13 }
 0x18a   :  { %v251_v2 = vsub.f32 %v233_v51, %v245_v61  ;;  %v265_v3 = vadd.f32 %v245_v61, %v243_v63  ;;  %v255_v19 = vmul.f32 2.0, %v247_v10  ;;  %v260_v22 = vadd.f32 0.0009, %v258_v16 }
 0x18c   :  { %v267_v6 = vadd.f32 0.0001, %v265_v3  ;;  %v257_v26 = vadd.f32 0.0001, %v255_v19  ;;  %v262_v29 = vmul.f32 %v260_v22, %v256_v25 }
 0x18d   :  { %v239_v7 = vpop.f32.mrf.mxu3 }
 0x18e   :  { %v253_v14 = vsub.f32 %v239_v7, %v247_v10 }
 0x18f   :  { %v224_v54 = vpop.f32.mrf.mxu1 }
 0x190   :  { %v248_v57 = vsub.f32 %v224_v54, %v242_v53  ;;  %v259_v17 = vmul.f32 2.0, %v253_v14 }
 0x192   :  { %v268_v59 = vadd.f32 %v250_v55, %v248_v57  ;;  %v261_v23 = vadd.f32 0.0009, %v259_v17 }
 0x194   :  { %v270_v62 = vadd.f32 0.0009, %v268_v59  ;;  %v263_v30 = vmul.f32 %v261_v23, %v257_v26 }
 0x196   :  { %v272_v0 = vmul.f32 %v270_v62, %v266_v60 }
 0x197   :  { %v227_v1 = vpop.f32.mrf.mxu1 }
 0x198   :  { %354 = vrcp.f32 %v272_v0  ;;  %v249_v4 = vsub.f32 %v227_v1, %v243_v63 }
 0x19a   :  { %v269_v5 = vadd.f32 %v251_v2, %v249_v4 }
 0x19c   :  { %v271_v8 = vadd.f32 0.0009, %v269_v5 }
 0x19e   :  { %v355_v11 = vpop.eup %354  ;;  %v273_v12 = vmul.f32 %v271_v8, %v267_v6 }
 0x19f   :  { %v276_v15 = vmul.f32 %v355_v11, %v272_v0 }
 0x1a0   :  { %356 = vrcp.f32 %v273_v12 }
 0x1a1   :  { %v278_v20 = vsub.f32 2.0, %v276_v15 }
 0x1a3   :  { %v280_v27 = vmul.f32 %v355_v11, %v278_v20 }
 0x1a5   :  { %v282_v32 = vmul.f32 %v280_v27, %v262_v29 }
 0x1a6   :  { %v357_v21 = vpop.eup %356 }
 0x1a7   :  { %v277_v24 = vmul.f32 %v357_v21, %v273_v12 }
 0x1a9   :  { %v279_v28 = vsub.f32 2.0, %v277_v24 }
 0x1ab   :  { %v281_v31 = vmul.f32 %v357_v21, %v279_v28 }
 0x1ad   :  { %v283_v33 = vmul.f32 %v281_v31, %v263_v30 }
 0x1af   :  { %v284_v34 = vadd.f32 %v283_v33, %v282_v32 }
 0x1b1   :  { %v285_v35 = vrot.slane %v284_v34, 4 }
 0x1b3   :  { %v286_v36 = vadd.f32 %v285_v35, %v284_v34 }
 0x1b5   :  { %v287_v37 = vrot.slane %v286_v36, 2 }
 0x1b7   :  { %v288_v38 = vadd.f32 %v287_v37, %v286_v36 }
 0x1b9   :  { %v289_v39 = vrot.slane %v288_v38, 1 }
 0x1bb   :  { %v290_v40 = vadd.f32 %v289_v39, %v288_v38 }
 0x1bd   :  { %291 = vst [vmem:[#allocation10] sm:$0x1] %v290_v40 }
 0x1be   :  { %302 = dma.vmem_to_hbm [thread:$0]  %s298_s3, 16, %s300_s11, [#allocation4]  }
 0x1bf   :  { %484 = dma.done.wait [#allocation4], 16  }
 0x1c0   :  { %485 = vsyncadd [#allocation4], 4294967280 }
 0x1c1   :  { %307 = vsyncpa [#allocation3], 1 }
 0x1c2   :  { %308 = vsyncpa [#allocation6], 1 }
 0x1c3   :  { %309 = vsyncpa [#allocation9], 1 }
 0x1c4   :  { %310 = vsyncpa [#allocation4], 1 }

// kernel: tpu_custom_call.1
= control target key start
LH: loop header
LB: loop body
LE: loop exit
PB: predicated region body
PF: predicated region fallthrough
CT: control target
= control target key end

     0   :  { %9 = vsyncpa [#allocation3], 0  ;;  %s543_s0 = inlined_call_operand.hbm [shape: f32[1,16,128], index: 0, kind: input, shape index: {}]   ;;  %s544_s1 = inlined_call_operand.hbm [shape: f32[1,16,128], index: 1, kind: input, shape index: {}]   ;;  %s545_s2 = inlined_call_operand.hbm [shape: f32[80,80], index: 2, kind: input, shape index: {}]   ;;  %s546_s3 = inlined_call_operand.hbm [shape: f32[128,128], index: 3, kind: input, shape index: {}]   ;;  %s547_s4 = inlined_call_operand.hbm [shape: f32[1,1,128], index: 4, kind: output, shape index: {}]  }
   0x1   :  { %10 = vsyncpa [#allocation6], 0 }
   0x2   :  { %11 = vsyncpa [#allocation9], 0 }
   0x3   :  { %12 = vsyncpa [#allocation4], 0  ;;  %s30_s17 = sshll.u32 %s544_s1, 4  ;;  %s486_s18 = smov [#allocation5]   ;;  %s31_s17 = int_to_ptr.hbm [resolvable:$true] %s30_s17 }
   0x4   :  { %s32_s19 = sshll.u32 %s486_s18, 4  ;;  %s17_s22 = sshll.u32 %s543_s0, 4  ;;  %s33_s19 = int_to_ptr.vmem [resolvable:$true] %s32_s19  ;;  %s18_s22 = int_to_ptr.hbm [resolvable:$true] %s17_s22 }
   0x5   :  { %s487_s23 = smov 128   ;;  %s488_s24 = smov 8  }
   0x6   :  { %38 = dma.hbm_to_vmem [thread:$0]  %s31_s17, 256, %s33_s19, [#allocation6], %s487_s23, %s487_s23, %s488_s24  }
   0x7   :  { %s489_s25 = smov [#allocation2]   ;;  %s43_s29 = sshll.u32 %s545_s2, 4  ;;  %s44_s29 = int_to_ptr.hbm [resolvable:$true] %s43_s29 }
   0x8   :  { %s19_s26 = sshll.u32 %s489_s25, 4  ;;  %s56_s5 = sshll.u32 %s546_s3, 4  ;;  %s20_s26 = int_to_ptr.vmem [resolvable:$true] %s19_s26  ;;  %s57_s5 = int_to_ptr.hbm [resolvable:$true] %s56_s5 }
   0x9   :  { %25 = dma.hbm_to_vmem [thread:$0]  %s18_s22, 256, %s20_s26, [#allocation3], %s487_s23, %s487_s23, %s488_s24  }
   0xa   :  { %s490_s6 = smov [#allocation7]   ;;  %s491_s0 = smov [#allocation8]  }
   0xb   :  { %s45_s7 = sshll.u32 %s490_s6, 4  ;;  %s58_s8 = sshll.u32 %s491_s0, 4  ;;  %s46_s7 = int_to_ptr.vmem [resolvable:$true] %s45_s7  ;;  %s59_s8 = int_to_ptr.vmem [resolvable:$true] %s58_s8 }
   0xc   :  { %51 = dma.hbm_to_vmem [thread:$0]  %s44_s29, 1280, %s46_s7, [#allocation6], %s487_s23, %s487_s23, %s488_s24  }
   0xd   :  { %64 = dma.hbm_to_vmem [thread:$0]  %s57_s5, 2048, %s59_s8, [#allocation9], %s487_s23, %s487_s23, %s488_s24  }
   0xe   :  { %478 = dma.done.wait [#allocation3], 256  }
   0xf   :  { %479 = vsyncadd [#allocation3], 4294967040 }
  0x10   :  { %480 = dma.done.wait [#allocation6], 1536  }
  0x11   :  { %481 = vsyncadd [#allocation6], 4294965760 }
  0x12   :  { %482 = dma.done.wait [#allocation9], 2048  }
  0x13   :  { %483 = vsyncadd [#allocation9], 4294965248  ;;  %v106_v0 = vld [vmem:[#allocation8 + $0x78] sm:$0xff]  ;;  %v105_v1 = vld [vmem:[#allocation8 + $0x70] sm:$0xff]  ;;  %vm164_vm0 = vcmask 654336   ;;  %s492_s2 = smov [#allocation10]  }
  0x14   :  { %321 = vmatpush.msra.mxu2 %v106_v0  ;;  %117 = vmatpush.msra.mxu0 %v106_v0  ;;  %v104_v2 = vld [vmem:[#allocation8 + $0x68] sm:$0xff]  ;;  %v103_v3 = vld [vmem:[#allocation8 + $0x60] sm:$0xff]  ;;  %v102_v4 = vld [vmem:[#allocation8 + $0x58] sm:$0xff]  ;;  %s297_s3 = sshll.u32 %s492_s2, 4  ;;  %s299_s11 = sshll.u32 %s547_s4, 4  ;;  %s298_s3 = int_to_ptr.vmem [resolvable:$true] %s297_s3  ;;  %s300_s11 = int_to_ptr.hbm [resolvable:$true] %s299_s11 }
  0x15   :  { %v101_v5 = vld [vmem:[#allocation8 + $0x50] sm:$0xff]  ;;  %v100_v6 = vld [vmem:[#allocation8 + $0x48] sm:$0xff]  ;;  %v99_v7 = vld [vmem:[#allocation8 + $0x40] sm:$0xff] }
  0x16   :  { %322 = vmatpush.msra.mxu2 %v105_v1  ;;  %118 = vmatpush.msra.mxu0 %v105_v1  ;;  %v98_v8 = vld [vmem:[#allocation8 + $0x38] sm:$0xff]  ;;  %v97_v9 = vld [vmem:[#allocation8 + $0x30] sm:$0xff]  ;;  %v96_v10 = vld [vmem:[#allocation8 + $0x28] sm:$0xff] }
  0x17   :  { %v95_v11 = vld [vmem:[#allocation8 + $0x20] sm:$0xff]  ;;  %v94_v12 = vld [vmem:[#allocation8 + $0x18] sm:$0xff]  ;;  %v93_v13 = vld [vmem:[#allocation8 + $0x10] sm:$0xff] }
  0x18   :  { %323 = vmatpush.msra.mxu2 %v104_v2  ;;  %119 = vmatpush.msra.mxu0 %v104_v2  ;;  %v107_v14 = vld [vmem:[#allocation2] sm:$0xff]  ;;  %v92_v15 = vld [vmem:[#allocation8 + $0x8] sm:$0xff]  ;;  %v91_v16 = vld [vmem:[#allocation8] sm:$0xff] }
  0x19   :  { %v111_v17 = vmul.f32 %v107_v14, %v107_v14  ;;  %v108_v18 = vld [vmem:[#allocation2 + $0x8] sm:$0xff]  ;;  %v109_v20 = vld [vmem:[#allocation5] sm:$0xff]  ;;  %v110_v22 = vld [vmem:[#allocation5 + $0x8] sm:$0xff] }
  0x1a   :  { %324 = vmatpush.msra.mxu2 %v103_v3  ;;  %120 = vmatpush.msra.mxu0 %v103_v3  ;;  %v112_v19 = vmul.f32 %v108_v18, %v108_v18  ;;  %v113_v21 = vmul.f32 %v109_v20, %v109_v20  ;;  %v114_v23 = vmul.f32 %v110_v22, %v110_v22  ;;  %v81_v36 = vld [vmem:[#allocation7] sm:$0xff]  ;;  %v87_v37 = vld [vmem:[#allocation7 + $0x30] sm:$0xff]  ;;  %v82_v38 = vld [vmem:[#allocation7 + $0x8] sm:$0xff] }
  0x1b   :  { %v115_v24 = vmul.f32 %v109_v20, %v107_v14  ;;  %v116_v25 = vmul.f32 %v110_v22, %v108_v18  ;;  %v88_v39 = vld [vmem:[#allocation7 + $0x38] sm:$0xff]  ;;  %v83_v40 = vld [vmem:[#allocation7 + $0x10] sm:$0xff]  ;;  %v89_v41 = vld [vmem:[#allocation7 + $0x40] sm:$0xff] }
  0x1c   :  { %325 = vmatpush.msra.mxu2 %v102_v4  ;;  %121 = vmatpush.msra.mxu0 %v102_v4  ;;  %v84_v42 = vld [vmem:[#allocation7 + $0x18] sm:$0xff]  ;;  %v90_v43 = vld [vmem:[#allocation7 + $0x48] sm:$0xff]  ;;  %v85_v44 = vld [vmem:[#allocation7 + $0x20] sm:$0xff] }
  0x1d   :  { %v86_v45 = vld [vmem:[#allocation7 + $0x28] sm:$0xff] }
  0x1e   :  { %326 = vmatpush.msra.mxu2 %v101_v5  ;;  %122 = vmatpush.msra.mxu0 %v101_v5 }
  0x20   :  { %327 = vmatpush.msra.mxu2 %v100_v6  ;;  %123 = vmatpush.msra.mxu0 %v100_v6 }
  0x22   :  { %328 = vmatpush.msra.mxu2 %v99_v7  ;;  %124 = vmatpush.msra.mxu0 %v99_v7 }
  0x24   :  { %329 = vmatpush.msra.mxu2 %v98_v8  ;;  %125 = vmatpush.msra.mxu0 %v98_v8 }
  0x26   :  { %330 = vmatpush.msra.mxu2 %v97_v9  ;;  %126 = vmatpush.msra.mxu0 %v97_v9 }
  0x28   :  { %331 = vmatpush.msra.mxu2 %v96_v10  ;;  %127 = vmatpush.msra.mxu0 %v96_v10 }
  0x2a   :  { %332 = vmatpush.msra.mxu2 %v95_v11  ;;  %128 = vmatpush.msra.mxu0 %v95_v11 }
  0x2c   :  { %333 = vmatpush.msra.mxu2 %v94_v12  ;;  %129 = vmatpush.msra.mxu0 %v94_v12 }
  0x2e   :  { %334 = vmatpush.msra.mxu2 %v93_v13  ;;  %130 = vmatpush.msra.mxu0 %v93_v13 }
  0x30   :  { %335 = vmatpush.msra.mxu2 %v92_v15  ;;  %131 = vmatpush.msra.mxu0 %v92_v15 }
  0x32   :  { %336 = vmatpush.msra.mxu2 %v91_v16  ;;  %132 = vmatpush.msra.mxu0 %v91_v16 }
  0x33   :  { %145 = vmatmul.f32.vlgmr.msra.gmra.mxu2 %v111_v17  ;;  %133 = vmatmul.f32.vlgmr.msra.gmra.mxu0 %v107_v14 }
  0x3b   :  { %148 = vmatmul.f32.gmra.mxu2 %v112_v19  ;;  %136 = vmatmul.f32.gmra.mxu0 %v108_v18 }
  0x43   :  { %151 = vmatmul.f32.gmra.mxu2 %v113_v21  ;;  %139 = vmatmul.f32.gmra.mxu0 %v109_v20 }
  0x4b   :  { %154 = vmatmul.f32.gmra.mxu2 %v114_v23  ;;  %142 = vmatmul.f32.gmra.mxu0 %v110_v22 }
  0x53   :  { %157 = vmatmul.f32.gmra.mxu2 %v115_v24 }
  0x5b   :  { %160 = vmatmul.f32.gmra.mxu2 %v116_v25 }
  0xb0   :  { %v134_v29 = vpop.f32.mrf.mxu0 }
  0xb6   :  { %v146_v26 = vpop.f32.mrf.mxu2 }
  0xb8   :  { %v137_v31 = vpop.f32.mrf.mxu0 }
  0xbe   :  { %v149_v27 = vpop.f32.mrf.mxu2 }
  0xc0   :  { %v140_v34 = vpop.f32.mrf.mxu0 }
  0xc6   :  { %v152_v28 = vpop.f32.mrf.mxu2 }
  0xc8   :  { %v143_v35 = vpop.f32.mrf.mxu0 }
  0xce   :  { %v155_v30 = vpop.f32.mrf.mxu2 }
  0xd6   :  { %v158_v32 = vpop.f32.mrf.mxu2 }
  0xde   :  { %v161_v33 = vpop.f32.mrf.mxu2 }
  0xdf   :  { %201 = vmatpush.msra.mxu1 %v161_v33  ;;  %337 = vmatpush.msra.mxu3 %v161_v33 }
  0xe1   :  { %202 = vmatpush.msra.mxu1 %v158_v32  ;;  %338 = vmatpush.msra.mxu3 %v158_v32 }
  0xe3   :  { %203 = vmatpush.msra.mxu1 %v155_v30  ;;  %339 = vmatpush.msra.mxu3 %v155_v30 }
  0xe5   :  { %204 = vmatpush.msra.mxu1 %v152_v28  ;;  %340 = vmatpush.msra.mxu3 %v152_v28 }
  0xe7   :  { %205 = vmatpush.msra.mxu1 %v149_v27  ;;  %341 = vmatpush.msra.mxu3 %v149_v27 }
  0xe9   :  { %206 = vmatpush.msra.mxu1 %v146_v26  ;;  %342 = vmatpush.msra.mxu3 %v146_v26 }
  0xeb   :  { %207 = vmatpush.msra.mxu1 %v143_v35  ;;  %343 = vmatpush.msra.mxu3 %v143_v35 }
  0xed   :  { %208 = vmatpush.msra.mxu1 %v140_v34  ;;  %344 = vmatpush.msra.mxu3 %v140_v34 }
  0xef   :  { %209 = vmatpush.msra.mxu1 %v137_v31  ;;  %345 = vmatpush.msra.mxu3 %v137_v31 }
  0xf1   :  { %210 = vmatpush.msra.mxu1 %v134_v29  ;;  %346 = vmatpush.msra.mxu3 %v134_v29 }
  0xf2   :  { %311 = vmatmul.msk.f32.vlgmr.msra.gmra.mxu1 %vm164_vm0, %v81_v36  ;;  %317 = vmatmul.msk.f32.vlgmr.msra.gmra.mxu3 %vm164_vm0, %v87_v37 }
  0xfa   :  { %312 = vmatmul.msk.f32.gmra.mxu1 %vm164_vm0, %v82_v38  ;;  %318 = vmatmul.msk.f32.gmra.mxu3 %vm164_vm0, %v88_v39 }
 0x102   :  { %313 = vmatmul.msk.f32.gmra.mxu1 %vm164_vm0, %v83_v40  ;;  %319 = vmatmul.msk.f32.gmra.mxu3 %vm164_vm0, %v89_v41 }
 0x10a   :  { %314 = vmatmul.msk.f32.gmra.mxu1 %vm164_vm0, %v84_v42  ;;  %320 = vmatmul.msk.f32.gmra.mxu3 %vm164_vm0, %v90_v43 }
 0x112   :  { %315 = vmatmul.msk.f32.gmra.mxu1 %vm164_vm0, %v85_v44 }
 0x11a   :  { %316 = vmatmul.msk.f32.gmra.mxu1 %vm164_vm0, %v86_v45 }
 0x16f   :  { %v212_v46 = vpop.f32.mrf.mxu1 }
 0x170   :  { %v242_v53 = vmul.f32 %v212_v46, %v212_v46 }
 0x175   :  { %v230_v48 = vpop.f32.mrf.mxu3 }
 0x177   :  { %v215_v47 = vpop.f32.mrf.mxu1 }
 0x178   :  { %v243_v63 = vmul.f32 %v215_v47, %v215_v47 }
 0x17d   :  { %v233_v51 = vpop.f32.mrf.mxu3 }
 0x17f   :  { %v218_v49 = vpop.f32.mrf.mxu1 }
 0x180   :  { %v244_v52 = vmul.f32 %v218_v49, %v218_v49  ;;  %v246_v9 = vmul.f32 %v218_v49, %v212_v46 }
 0x182   :  { %v250_v55 = vsub.f32 %v230_v48, %v244_v52  ;;  %v264_v56 = vadd.f32 %v244_v52, %v242_v53  ;;  %v254_v18 = vmul.f32 2.0, %v246_v9 }
 0x184   :  { %v266_v60 = vadd.f32 0.0001, %v264_v56  ;;  %v256_v25 = vadd.f32 0.0001, %v254_v18 }
 0x185   :  { %v236_v58 = vpop.f32.mrf.mxu3 }
 0x186   :  { %v252_v13 = vsub.f32 %v236_v58, %v246_v9 }
 0x187   :  { %v221_v50 = vpop.f32.mrf.mxu1 }
 0x188   :  { %v245_v61 = vmul.f32 %v221_v50, %v221_v50  ;;  %v247_v10 = vmul.f32 %v221_v50, %v215_v47  ;;  %v258_v16 = vmul.f32 2.0, %v252_v13 }
 0x18a   :  { %v251_v2 = vsub.f32 %v233_v51, %v245_v61  ;;  %v265_v3 = vadd.f32 %v245_v61, %v243_v63  ;;  %v255_v19 = vmul.f32 2.0, %v247_v10  ;;  %v260_v22 = vadd.f32 0.0009, %v258_v16 }
 0x18c   :  { %v267_v6 = vadd.f32 0.0001, %v265_v3  ;;  %v257_v26 = vadd.f32 0.0001, %v255_v19  ;;  %v262_v29 = vmul.f32 %v260_v22, %v256_v25 }
 0x18d   :  { %v239_v7 = vpop.f32.mrf.mxu3 }
 0x18e   :  { %v253_v14 = vsub.f32 %v239_v7, %v247_v10 }
 0x18f   :  { %v224_v54 = vpop.f32.mrf.mxu1 }
 0x190   :  { %v248_v57 = vsub.f32 %v224_v54, %v242_v53  ;;  %v259_v17 = vmul.f32 2.0, %v253_v14 }
 0x192   :  { %v268_v59 = vadd.f32 %v250_v55, %v248_v57  ;;  %v261_v23 = vadd.f32 0.0009, %v259_v17 }
 0x194   :  { %v270_v62 = vadd.f32 0.0009, %v268_v59  ;;  %v263_v30 = vmul.f32 %v261_v23, %v257_v26 }
 0x196   :  { %v272_v0 = vmul.f32 %v270_v62, %v266_v60 }
 0x197   :  { %v227_v1 = vpop.f32.mrf.mxu1 }
 0x198   :  { %354 = vrcp.f32 %v272_v0  ;;  %v249_v4 = vsub.f32 %v227_v1, %v243_v63 }
 0x19a   :  { %v269_v5 = vadd.f32 %v251_v2, %v249_v4 }
 0x19c   :  { %v271_v8 = vadd.f32 0.0009, %v269_v5 }
 0x19e   :  { %v355_v11 = vpop.eup %354  ;;  %v273_v12 = vmul.f32 %v271_v8, %v267_v6 }
 0x19f   :  { %v276_v15 = vmul.f32 %v355_v11, %v272_v0 }
 0x1a0   :  { %356 = vrcp.f32 %v273_v12 }
 0x1a1   :  { %v278_v20 = vsub.f32 2.0, %v276_v15 }
 0x1a3   :  { %v280_v27 = vmul.f32 %v355_v11, %v278_v20 }
 0x1a5   :  { %v282_v32 = vmul.f32 %v280_v27, %v262_v29 }
 0x1a6   :  { %v357_v21 = vpop.eup %356 }
 0x1a7   :  { %v277_v24 = vmul.f32 %v357_v21, %v273_v12 }
 0x1a9   :  { %v279_v28 = vsub.f32 2.0, %v277_v24 }
 0x1ab   :  { %v281_v31 = vmul.f32 %v357_v21, %v279_v28 }
 0x1ad   :  { %v283_v33 = vmul.f32 %v281_v31, %v263_v30 }
 0x1af   :  { %v284_v34 = vadd.f32 %v283_v33, %v282_v32 }
 0x1b1   :  { %v285_v35 = vrot.slane %v284_v34, 4 }
 0x1b3   :  { %v286_v36 = vadd.f32 %v285_v35, %v284_v34 }
 0x1b5   :  { %v287_v37 = vrot.slane %v286_v36, 2 }
 0x1b7   :  { %v288_v38 = vadd.f32 %v287_v37, %v286_v36 }
 0x1b9   :  { %v289_v39 = vrot.slane %v288_v38, 1 }
 0x1bb   :  { %v290_v40 = vadd.f32 %v289_v39, %v288_v38 }
 0x1bd   :  { %291 = vst [vmem:[#allocation10] sm:$0x1] %v290_v40 }
 0x1be   :  { %302 = dma.vmem_to_hbm [thread:$0]  %s298_s3, 16, %s300_s11, [#allocation4]  }
 0x1bf   :  { %484 = dma.done.wait [#allocation4], 16  }
 0x1c0   :  { %485 = vsyncadd [#allocation4], 4294967280 }
 0x1c1   :  { %307 = vsyncpa [#allocation3], 1 }
 0x1c2   :  { %308 = vsyncpa [#allocation6], 1 }
 0x1c3   :  { %309 = vsyncpa [#allocation9], 1 }
 0x1c4   :  { %310 = vsyncpa [#allocation4], 1 }

</bundles_post_ra>
